<compile_context>
chip_gen: v7x
topology: tpu7x:2x2x1
jax: 0.10.0
libtpu: 0.0.40
codegen_flags: <defaults>
</compile_context>

<pallas_src>
import math
from functools import partial, lru_cache

import numpy as np
import jax
import jax.numpy as jnp
from jax.experimental import pallas as pl
from jax.experimental.pallas import tpu as pltpu

BN_EPS = 1e-5
# _init_params sets BN gamma=1, beta=0; running stats are defaults (mean=0,
# var=1), so eval-mode BN folds to a single per-channel scale 1/sqrt(1+eps)
# which is folded offline into the preceding conv weights.  Only the (zero)
# BN biases remain as in-kernel adds so real checkpoint stats could still be
# plugged in.
BN_SCALE = 1.0 / math.sqrt(1.0 + BN_EPS)

BF16 = jnp.bfloat16
F32 = jnp.float32

# scoped-VMEM ceiling for the fused kernels (fits v7x's 64 MiB physical VMEM)
VMEM_LIMIT = 48 * 1024 * 1024

DW_TAPS = tuple((dh - 2, dw - 2) for dh in range(5) for dw in range(5))  # 5x5


def _round_up(x, m):
    return ((x + m - 1) // m) * m


# --------------------------------------------------------------------------
# static host-side tables (vectorized numpy, cached per shape)
# --------------------------------------------------------------------------

@lru_cache(maxsize=None)
def _shift_mask(H, W, taps, dtype):
    """mask[i*W+j, t] = 1 iff tap offset taps[t] applied at (i, j) stays in-image."""
    ii = np.arange(H).reshape(H, 1, 1)
    jj = np.arange(W).reshape(1, W, 1)
    oh = np.asarray([t[0] for t in taps]).reshape(1, 1, -1)
    ow = np.asarray([t[1] for t in taps]).reshape(1, 1, -1)
    valid = ((ii + oh >= 0) & (ii + oh < H) & (jj + ow >= 0) & (jj + ow < W))
    return jnp.asarray(valid.reshape(H * W, len(taps)).astype(np.float32), dtype)


@lru_cache(maxsize=None)
def _interp_matrix(out_size, in_size):
    """(out, in) bilinear align_corners=True interpolation matrix (2 taps/row)."""
    m = np.zeros((out_size, in_size), np.float32)
    if in_size == 1:
        m[:, 0] = 1.0
        return m
    if out_size == 1:
        src = np.zeros((1,), np.float64)
    else:
        src = np.arange(out_size, dtype=np.float64) * (in_size - 1) / (out_size - 1)
    lo = np.clip(np.floor(src).astype(np.int64), 0, in_size - 2)
    f = (src - lo).astype(np.float32)
    rows = np.arange(out_size)
    m[rows, lo] = 1.0 - f
    m[rows, lo + 1] += f
    return m


@lru_cache(maxsize=None)
def _lerp_coeffs(out_size, in_size):
    """align_corners=True (low index, fraction) per output position."""
    coeffs = []
    for o in range(out_size):
        if out_size == 1 or in_size == 1:
            src = 0.0
        else:
            src = o * (in_size - 1) / (out_size - 1)
        lo = int(min(max(math.floor(src), 0), max(in_size - 2, 0)))
        coeffs.append((lo, float(src - lo)))
    return tuple(coeffs)


# --------------------------------------------------------------------------
# K1: generic 1x1-conv = matmul (BN folded) + bias + ReLU, M-tiled parallel grid
# --------------------------------------------------------------------------

def _mm_bias_act_kernel(x_ref, w_ref, b_ref, o_ref, *, relu):
    acc = jnp.dot(x_ref[...].astype(BF16), w_ref[...],
                  preferred_element_type=F32)
    acc = acc + b_ref[...]
    if relu:
        acc = jnp.maximum(acc, 0.0)
    o_ref[...] = acc.astype(o_ref.dtype)


def matmul_bias_act(x2d, w, bias, relu=True, out_dtype=BF16):
    """relu((x @ w) + bias); rows tiled (1024) so big M stays VMEM-safe."""
    M, K = x2d.shape
    N = w.shape[1]
    bm = min(1024, _round_up(M, 8))
    Mp = _round_up(M, bm)
    if Mp != M:
        x2d = jnp.pad(x2d, ((0, Mp - M), (0, 0)))
    out = pl.pallas_call(
        partial(_mm_bias_act_kernel, relu=relu),
        out_shape=jax.ShapeDtypeStruct((Mp, N), out_dtype),
        grid=(Mp // bm,),
        in_specs=[pl.BlockSpec((bm, K), lambda i: (i, 0)),
                  pl.BlockSpec((K, N), lambda i: (0, 0)),
                  pl.BlockSpec((1, N), lambda i: (0, 0))],
        out_specs=pl.BlockSpec((bm, N), lambda i: (i, 0)),
        compiler_params=pltpu.CompilerParams(
            dimension_semantics=("parallel",),
            vmem_limit_bytes=VMEM_LIMIT),
    )(x2d, w, bias.reshape(1, N).astype(F32))
    # NOTE: padded rows see relu(bias) but are sliced off before any consumer.
    return out[:M] if Mp != M else out


def conv1x1_bn_relu(x4d, w, bias):
    B, H, W, C = x4d.shape
    N = w.shape[1]
    y = matmul_bias_act(x4d.reshape(B * H * W, C), w, bias, relu=True)
    return y.reshape(B, H, W, N)


# --------------------------------------------------------------------------
# K2: fully fused ASPP (5 branches + split-K projection), per-image grid
# --------------------------------------------------------------------------

def _aspp_kernel(x_ref, w0_ref, wa_ref, wp_ref, wproj_ref, mask_ref,
                 bb_ref, pb_ref, o_ref, *, rates, W, cin, cout):
    x = x_ref[0]                                             # (HW, Cin) bf16
    M = x.shape[0]

    # branch 0: 1x1 conv (BN scale folded) + bias + ReLU, plus its slice of the
    # split-K projection: proj(concat(o0..o4)) == sum_i o_i @ Wproj_i
    b0 = jnp.dot(x, w0_ref[...], preferred_element_type=F32)
    b0 = jnp.maximum(b0 + bb_ref[0:1, :], 0.0)
    acc = jnp.dot(b0.astype(BF16), wproj_ref[0:cout, :],
                  preferred_element_type=F32)

    # atrous 3x3 branches: roll the bf16 *input* (less XLU traffic than rolling
    # the f32 output), per-tap matmul, zero-padding validity mask on the output.
    for ri, r in enumerate(rates):
        ba = None
        for t in range(9):
            dh, dw = t // 3, t % 3
            k = (dh - 1) * r * W + (dw - 1) * r
            idx = ri * 9 + t
            shift = (-k) % M
            xt = pltpu.roll(x, shift=shift, axis=0) if shift else x
            y = jnp.dot(xt, wa_ref[idx * cin:(idx + 1) * cin, :],
                        preferred_element_type=F32)
            if k != 0:
                y = y * mask_ref[:, idx:idx + 1]
            ba = y if ba is None else ba + y
        ba = jnp.maximum(ba + bb_ref[ri + 1:ri + 2, :], 0.0)
        acc = acc + jnp.dot(ba.astype(BF16),
                            wproj_ref[(ri + 1) * cout:(ri + 2) * cout, :],
                            preferred_element_type=F32)

    # image-pooling branch at (1, Cout): AdaptiveAvgPool2d(1) + 1x1 conv + ReLU
    # (panoptic-deeplab's ASPPPooling has no BN) + its projection slice,
    # broadcast-added to every pixel.
    pooled = jnp.dot(jnp.ones((1, M), BF16), x,
                     preferred_element_type=F32) * (1.0 / M)          # (1, Cin)
    pooled = jnp.maximum(jnp.dot(pooled.astype(BF16), wp_ref[...],
                                 preferred_element_type=F32), 0.0)    # (1, Cout)
    pooled = jnp.dot(pooled.astype(BF16), wproj_ref[4 * cout:5 * cout, :],
                     preferred_element_type=F32)                      # (1, Cout)
    acc = acc + pooled

    # projection bias + ReLU (nn.Dropout(0.5) is identity at inference)
    o_ref[0] = jnp.maximum(acc + pb_ref[...], 0.0).astype(o_ref.dtype)


def aspp_forward(x4d, p):
    # TODO(synk): at Cityscapes-scale res5 a single image still needs H row-block
    # tiling with a max(rates)-row halo (<=24 MiB working set on v7x); per-image
    # tiling keeps the zero-pad masks exact (image boundary == tile boundary).
    B, H, W, cin = x4d.shape
    cout = p['proj_b'].shape[0]
    rates = p['rates']
    HW = H * W
    taps = tuple(((dh - 1) * r, (dw - 1) * r)
                 for r in rates for dh in range(3) for dw in range(3))
    mask = _shift_mask(H, W, taps, F32)
    out = pl.pallas_call(
        partial(_aspp_kernel, rates=rates, W=W, cin=cin, cout=cout),
        out_shape=jax.ShapeDtypeStruct((B, HW, cout), BF16),
        grid=(B,),
        in_specs=[
            pl.BlockSpec((1, HW, cin), lambda b: (b, 0, 0)),
            pl.BlockSpec((cin, cout), lambda b: (0, 0)),
            pl.BlockSpec((len(rates) * 9 * cin, cout), lambda b: (0, 0)),
            pl.BlockSpec((cin, cout), lambda b: (0, 0)),
            pl.BlockSpec((5 * cout, cout), lambda b: (0, 0)),
            pl.BlockSpec((HW, len(taps)), lambda b: (0, 0)),
            pl.BlockSpec((1 + len(rates), cout), lambda b: (0, 0)),
            pl.BlockSpec((1, cout), lambda b: (0, 0)),
        ],
        out_specs=pl.BlockSpec((1, HW, cout), lambda b: (b, 0, 0)),
        compiler_params=pltpu.CompilerParams(
            dimension_semantics=("parallel",),
            vmem_limit_bytes=VMEM_LIMIT),
    )(x4d.reshape(B, HW, cin).astype(BF16), p['c0_w'], p['atrous_w'],
      p['pool_w'], p['proj_w'], mask, p['branch_b'],
      p['proj_b'].reshape(1, cout))
    return out.reshape(B, H, W, cout)


# --------------------------------------------------------------------------
# shared 5x5 depthwise tap accumulation (bf16 rolls/muls, f32 accumulate)
# --------------------------------------------------------------------------

def _dw_acc(x, w_ref, mask_ref, W, M):
    """25-tap 5x5 depthwise accumulation on a flattened (M=H*W, C) bf16 image.

    Rolls, masks and weight multiplies stay bf16; only the add into `acc` is
    f32.  TODO(synk): replace the per-tap mask multiply with a border-only
    correction (it is ~1/3 of the depthwise VALU work).
    """
    acc = (x * w_ref[12:13, :]).astype(F32)          # center tap: no roll/mask
    for t in range(25):
        if t == 12:
            continue
        dh, dw = t // 5, t % 5
        k = (dh - 2) * W + (dw - 2)
        shift = (-k) % M
        xt = pltpu.roll(x, shift=shift, axis=0) if shift else x
        acc = acc + (xt * mask_ref[:, t:t + 1]) * w_ref[t:t + 1, :]
    return acc


# --------------------------------------------------------------------------
# K3: fused  bilinear-upsample + channel-concat + depthwise-separable fuse conv
# --------------------------------------------------------------------------

def _fuse_stage_kernel(x_ref, l_ref, rh_ref, dwx_ref, dwl_ref, mask_ref,
                       dwbx_ref, dwbl_ref, pwx_ref, pwl_ref, pwb_ref,
                       o_ref, xup_ref, *, cx, Wo, w_coeffs):
    Ho = rh_ref.shape[0]
    # 1) bilinear H-pass over the whole low-res image as one MXU matmul
    xh = jnp.dot(rh_ref[...], x_ref[0], preferred_element_type=F32)  # (Ho, Wx*Cx)
    # 2) W-pass: 2-tap lerp per output column into a VMEM scratch.
    # TODO(synk): at very large Wo this unrolled loop should become a
    # lane-major matmul/gather pass and the whole kernel row-block tiled.
    for wo, (lo, f) in enumerate(w_coeffs):
        a = xh[:, lo * cx:(lo + 1) * cx]
        if f != 0.0:
            a = a * (1.0 - f) + xh[:, (lo + 1) * cx:(lo + 2) * cx] * f
        xup_ref[:, wo:wo + 1, :] = a[:, None, :].astype(BF16)
    xu = xup_ref[...].reshape(Ho * Wo, cx)           # upsampled ASPP/decoder feat
    l = l_ref[0]                                      # projected low-level feat
    M = Ho * Wo
    # 3) 5x5 depthwise over the (virtually) channel-concatenated input
    hx = jnp.maximum(_dw_acc(xu, dwx_ref, mask_ref, Wo, M) + dwbx_ref[...], 0.0)
    hl = jnp.maximum(_dw_acc(l, dwl_ref, mask_ref, Wo, M) + dwbl_ref[...], 0.0)
    # 4) pointwise 1x1 as split-K over the two channel groups + bias + ReLU
    h = (jnp.dot(hx.astype(BF16), pwx_ref[...], preferred_element_type=F32)
         + jnp.dot(hl.astype(BF16), pwl_ref[...], preferred_element_type=F32))
    o_ref[0] = jnp.maximum(h + pwb_ref[...], 0.0).astype(o_ref.dtype)


def fuse_stage_forward(x4d, l4d, p):
    """F.interpolate(x, size=l, bilinear, align_corners) + cat((x, l), C) +
    5x5 depthwise-separable conv, fused in one per-image kernel (no HBM
    round-trip of the concatenated intermediate)."""
    B, Hx, Wx, cx = x4d.shape
    _, Ho, Wo, cl = l4d.shape
    cdec = p['pw_b'].shape[0]
    HWo = Ho * Wo
    rh = jnp.asarray(_interp_matrix(Ho, Hx), BF16)
    w_coeffs = _lerp_coeffs(Wo, Wx)
    mask = _shift_mask(Ho, Wo, DW_TAPS, BF16)
    dwx, dwl = p['dw_w'][:, :cx], p['dw_w'][:, cx:]
    pwx, pwl = p['pw_w'][:cx, :], p['pw_w'][cx:, :]
    dwbx = p['dw_b'][:cx].reshape(1, cx)
    dwbl = p['dw_b'][cx:].reshape(1, cl)
    out = pl.pallas_call(
        partial(_fuse_stage_kernel, cx=cx, Wo=Wo, w_coeffs=w_coeffs),
        out_shape=jax.ShapeDtypeStruct((B, HWo, cdec), BF16),
        grid=(B,),
        in_specs=[
            pl.BlockSpec((1, Hx, Wx * cx), lambda b: (b, 0, 0)),
            pl.BlockSpec((1, HWo, cl), lambda b: (b, 0, 0)),
            pl.BlockSpec((Ho, Hx), lambda b: (0, 0)),
            pl.BlockSpec((25, cx), lambda b: (0, 0)),
            pl.BlockSpec((25, cl), lambda b: (0, 0)),
            pl.BlockSpec((HWo, 25), lambda b: (0, 0)),
            pl.BlockSpec((1, cx), lambda b: (0, 0)),
            pl.BlockSpec((1, cl), lambda b: (0, 0)),
            pl.BlockSpec((cx, cdec), lambda b: (0, 0)),
            pl.BlockSpec((cl, cdec), lambda b: (0, 0)),
            pl.BlockSpec((1, cdec), lambda b: (0, 0)),
        ],
        out_specs=pl.BlockSpec((1, HWo, cdec), lambda b: (b, 0, 0)),
        scratch_shapes=[pltpu.VMEM((Ho, Wo, cx), BF16)],
        compiler_params=pltpu.CompilerParams(
            dimension_semantics=("parallel",),
            vmem_limit_bytes=VMEM_LIMIT),
    )(x4d.reshape(B, Hx, Wx * cx), l4d.reshape(B, HWo, cl), rh,
      dwx, dwl, mask, dwbx, dwbl, pwx, pwl, p['pw_b'].reshape(1, cdec))
    return out.reshape(B, Ho, Wo, cdec)


# --------------------------------------------------------------------------
# K4: fused head (depthwise-separable conv tower + classifier 1x1 conv)
# --------------------------------------------------------------------------

def _head_kernel(x_ref, dw_ref, mask_ref, dwb_ref, pw_ref, pwb_ref,
                 clsw_ref, clsb_ref, o_ref, *, W):
    x = x_ref[0]                                     # (HW, C) bf16
    M = x.shape[0]
    h = jnp.maximum(_dw_acc(x, dw_ref, mask_ref, W, M) + dwb_ref[...], 0.0)
    h = jnp.dot(h.astype(BF16), pw_ref[...], preferred_element_type=F32)
    h = jnp.maximum(h + pwb_ref[...], 0.0)
    y = jnp.dot(h.astype(BF16), clsw_ref[...],
                preferred_element_type=F32) + clsb_ref[...]
    o_ref[0] = y.astype(o_ref.dtype)


def head_forward_one(x4d, p, cls_w, cls_b):
    # TODO(synk): at Cityscapes-scale res2 this kernel needs row-block tiling
    # with a 2-row halo in addition to the per-image grid.
    B, H, W, C = x4d.shape
    HW = H * W
    cmid = p['pw_b'].shape[0]
    n = cls_w.shape[1]
    mask = _shift_mask(H, W, DW_TAPS, BF16)
    out = pl.pallas_call(
        partial(_head_kernel, W=W),
        out_shape=jax.ShapeDtypeStruct((B, HW, n), F32),
        grid=(B,),
        in_specs=[
            pl.BlockSpec((1, HW, C), lambda b: (b, 0, 0)),
            pl.BlockSpec((25, C), lambda b: (0, 0)),
            pl.BlockSpec((HW, 25), lambda b: (0, 0)),
            pl.BlockSpec((1, C), lambda b: (0, 0)),
            pl.BlockSpec((C, cmid), lambda b: (0, 0)),
            pl.BlockSpec((1, cmid), lambda b: (0, 0)),
            pl.BlockSpec((cmid, n), lambda b: (0, 0)),
            pl.BlockSpec((1, n), lambda b: (0, 0)),
        ],
        out_specs=pl.BlockSpec((1, HW, n), lambda b: (b, 0, 0)),
        compiler_params=pltpu.CompilerParams(
            dimension_semantics=("parallel",),
            vmem_limit_bytes=VMEM_LIMIT),
    )(x4d.reshape(B, HW, C), p['dw_w'], mask, p['dw_b'].reshape(1, C),
      p['pw_w'], p['pw_b'].reshape(1, cmid), cls_w, cls_b.reshape(1, n))
    return out.reshape(B, H, W, n)


# --------------------------------------------------------------------------
# K5: final plane-major bilinear upsample (lane-dense, emits NCHW directly)
# --------------------------------------------------------------------------

def _plane_resize_kernel(x_ref, rh_ref, rw_ref, o_ref):
    # bilinear(align_corners) of one (Hi, Wi) plane == Rh @ X @ RwT
    t = jnp.dot(rh_ref[...], x_ref[0], preferred_element_type=F32)    # (Ho, Wi)
    o_ref[0] = jnp.dot(t, rw_ref[...], preferred_element_type=F32)    # (Ho, Wo)


def plane_resize(planes, Ho, Wo):
    N, Hi, Wi = planes.shape
    rh = jnp.asarray(_interp_matrix(Ho, Hi), F32)            # (Ho, Hi)
    rw = jnp.asarray(_interp_matrix(Wo, Wi).T, F32)          # (Wi, Wo)
    return pl.pallas_call(
        _plane_resize_kernel,
        out_shape=jax.ShapeDtypeStruct((N, Ho, Wo), F32),
        grid=(N,),
        in_specs=[pl.BlockSpec((1, Hi, Wi), lambda n: (n, 0, 0)),
                  pl.BlockSpec((Ho, Hi), lambda n: (0, 0)),
                  pl.BlockSpec((Wi, Wo), lambda n: (0, 0))],
        out_specs=pl.BlockSpec((1, Ho, Wo), lambda n: (n, 0, 0)),
        compiler_params=pltpu.CompilerParams(
            dimension_semantics=("parallel",),
            vmem_limit_bytes=VMEM_LIMIT),
    )(planes, rh, rw)


# --------------------------------------------------------------------------
# parameter construction (synthetic, deterministic; BN scales folded offline)
# --------------------------------------------------------------------------

class KeyGen:
    def __init__(self, seed):
        self.key = jax.random.PRNGKey(seed)

    def __call__(self):
        self.key, k = jax.random.split(self.key)
        return k


def make_aspp_params(kg, cin, cout, rates):
    p = {'rates': tuple(rates)}
    p['c0_w'] = (0.001 * BN_SCALE * jax.random.normal(kg(), (cin, cout))).astype(BF16)
    aw = [0.001 * BN_SCALE * jax.random.normal(kg(), (9 * cin, cout)) for _ in rates]
    p['atrous_w'] = jnp.concatenate(aw, axis=0).astype(BF16)      # (27*Cin, Cout)
    p['branch_b'] = jnp.zeros((1 + len(rates), cout), F32)
    p['pool_w'] = (0.001 * jax.random.normal(kg(), (cin, cout))).astype(BF16)  # no BN
    p['proj_w'] = (0.001 * BN_SCALE * jax.random.normal(kg(), (5 * cout, cout))).astype(BF16)
    p['proj_b'] = jnp.zeros((cout,), F32)
    return p


def make_dsconv_params(kg, cin, cout):
    p = {}
    p['dw_w'] = (0.001 * BN_SCALE * jax.random.normal(kg(), (25, cin))).astype(BF16)
    p['dw_b'] = jnp.zeros((cin,), F32)
    p['pw_w'] = (0.001 * BN_SCALE * jax.random.normal(kg(), (cin, cout))).astype(BF16)
    p['pw_b'] = jnp.zeros((cout,), F32)
    return p


def make_decoder_params(kg, in_channels, low_level_channels,
                        low_level_channels_project, decoder_channels,
                        atrous_rates, aspp_channels=None):
    if aspp_channels is None:
        aspp_channels = decoder_channels
    p = {'aspp': make_aspp_params(kg, in_channels, aspp_channels, atrous_rates),
         'n_stage': len(low_level_channels)}
    for i in range(len(low_level_channels)):
        p[f'proj{i}_w'] = (0.001 * BN_SCALE * jax.random.normal(
            kg(), (low_level_channels[i], low_level_channels_project[i]))).astype(BF16)
        p[f'proj{i}_b'] = jnp.zeros((low_level_channels_project[i],), F32)
        fuse_in = (aspp_channels if i == 0 else decoder_channels) + low_level_channels_project[i]
        p[f'fuse{i}'] = make_dsconv_params(kg, fuse_in, decoder_channels)
    return p


def make_head_params(kg, decoder_channels, head_channels, num_classes, class_key):
    p = {'class_key': tuple(class_key)}
    for nc, key in zip(num_classes, class_key):
        p[key] = {
            'fuse': make_dsconv_params(kg, decoder_channels, head_channels),
            'cls_w': (0.001 * jax.random.normal(kg(), (head_channels, nc))).astype(BF16),
            'cls_b': (0.001 * jax.random.normal(kg(), (nc,))).astype(F32),
        }
    return p


def make_encoder_params(kg, cin):
    p = {}
    for key, ch in (('res2', 24), ('res3', 32), ('res5', 320)):
        p[key + '_w'] = (0.001 * BN_SCALE * jax.random.normal(kg(), (cin, ch))).astype(BF16)
        p[key + '_b'] = jnp.zeros((ch,), F32)
    return p


# --------------------------------------------------------------------------
# model forward (inference, targets=None)
# --------------------------------------------------------------------------

def encoder_forward(x, p):
    # TODO(synk): pretrained MobileNetV2/Xception backbone (external .pth load)
    # has no in-script equivalent; replaced by a synthetic strided-subsample +
    # folded-BN 1x1-conv stem producing res2/res3/res5 with the strides and
    # channel counts the decoders expect (24@/4, 32@/8, 320@/16, mobilenetV2).
    feats = {}
    for key, stride in (('res2', 4), ('res3', 8), ('res5', 16)):
        xs = x[:, ::stride, ::stride, :]
        feats[key] = conv1x1_bn_relu(xs, p[key + '_w'], p[key + '_b'])
    return feats


def decoder_forward(features, p, low_level_key=('res3', 'res2'), feature_key='res5'):
    x = aspp_forward(features[feature_key], p['aspp'])
    for i in range(p['n_stage']):
        l = features[low_level_key[i]]
        l = conv1x1_bn_relu(l, p[f'proj{i}_w'], p[f'proj{i}_b'])
        x = fuse_stage_forward(x, l, p[f'fuse{i}'])   # fused upsample+concat+dsconv
    return x


def head_forward(x, p):
    pred = {}
    for key in p['class_key']:
        hp = p[key]
        pred[key] = head_forward_one(x, hp['fuse'], hp['cls_w'], hp['cls_b'])
    return pred


def upsample_predictions(pred, input_shape):
    """Upsample all heads (shared res2 resolution) with one lane-dense kernel.

    Channels are packed into plane-major (B*C, H, W) with a cheap res2-scale
    transpose; the kernel emits NCHW directly so no full-resolution transpose
    remains.  The reference's integer offset rescale is folded in before
    interpolation (a scalar multiply commutes with a linear interpolation)."""
    keys = list(pred.keys())
    parts = []
    for k in keys:
        v = pred[k]                                   # (B, Hi, Wi, nk) f32
        if 'offset' in k:
            v = v * float((input_shape[0] - 1) // (v.shape[1] - 1))
        parts.append(v)
    cat = jnp.concatenate(parts, axis=-1)
    B, Hi, Wi, Ct = cat.shape
    planes = jnp.transpose(cat, (0, 3, 1, 2)).reshape(B * Ct, Hi, Wi)
    Ho, Wo = int(input_shape[0]), int(input_shape[1])
    up = plane_resize(planes, Ho, Wo).reshape(B, Ct, Ho, Wo)   # already NCHW
    out, c0 = {}, 0
    for k in keys:
        nc = pred[k].shape[-1]
        out[k] = up[:, c0:c0 + nc]
        c0 += nc
    return out


def panoptic_segment_forward(x_nchw, params):
    """Inference path of PanopticSegment.forward (targets=None)."""
    x = jnp.transpose(x_nchw, (0, 2, 3, 1))          # NCHW -> NHWC
    input_shape = x.shape[1:3]
    features = encoder_forward(x, params['encoder'])
    pred = {}
    # TODO(synk): on v7x the semantic and instance branches are independent and
    # could run concurrently on the two TensorCores via pl.core_map; sequential here.
    sem = decoder_forward(features, params['semantic_decoder'])
    pred.update(head_forward(sem, params['semantic_head']))
    ins = decoder_forward(features, params['instance_decoder'])
    pred.update(head_forward(ins, params['instance_head']))
    return upsample_predictions(pred, input_shape)    # dict of NCHW f32 arrays


# TODO(synk): the training branch (RegularCE/DeepLabCE losses, AverageMeters,
# targets path) is not exercised by the inference forward and is not implemented.


if __name__ == "__main__":
    kg = KeyGen(42)
    params = {
        'encoder': make_encoder_params(kg, 3),
        'semantic_decoder': make_decoder_params(
            kg, in_channels=320, low_level_channels=(32, 24),
            low_level_channels_project=(64, 32), decoder_channels=256,
            atrous_rates=(6, 12, 18), aspp_channels=None),
        'instance_decoder': make_decoder_params(
            kg, in_channels=320, low_level_channels=(32, 24),
            low_level_channels_project=(32, 16), decoder_channels=128,
            atrous_rates=(6, 12, 18), aspp_channels=256),
        'semantic_head': make_head_params(kg, 256, 256, [19], ['semantic']),
        'instance_head': make_head_params(kg, 128, 128, [1, 2], ['center', 'offset']),
    }

    x = jax.random.normal(jax.random.PRNGKey(0), (2, 3, 64, 64), jnp.float32)
    out = panoptic_segment_forward(x, params)
    out = jax.block_until_ready(out)

    expected = {'semantic': (2, 19, 64, 64),
                'center': (2, 1, 64, 64),
                'offset': (2, 2, 64, 64)}
    for k, s in expected.items():
        assert out[k].shape == s, (k, out[k].shape)
        assert out[k].dtype == jnp.float32
        assert bool(jnp.all(jnp.isfinite(out[k])))
    print("KERNEL_OK")
</pallas_src>

<mosaic_0001>
module attributes {stable_mosaic.version = 11 : i64} {
  func.func @_mm_bias_act_kernel(%arg0: i32, %arg1: memref<512x3xf32, #tpu.memory_space<vmem>>, %arg2: memref<3x24xbf16, #tpu.memory_space<vmem>>, %arg3: memref<1x24xf32, #tpu.memory_space<vmem>>, %arg4: memref<512x24xbf16, #tpu.memory_space<vmem>>) attributes {dimension_semantics = [#tpu.dimension_semantics<parallel>], iteration_bounds = array<i64: 1>, scalar_prefetch = 0 : i64, scratch_operands = 0 : i64, tpu.core_type = #tpu.core_type<tc>, window_params = [{transform_indices = @transform_0, window_bounds = array<i64: 512, 3>}, {pipeline_mode = #tpu.pipeline_mode<synchronous>, transform_indices = @transform_1, window_bounds = array<i64: 3, 24>}, {pipeline_mode = #tpu.pipeline_mode<synchronous>, transform_indices = @transform_2, window_bounds = array<i64: 1, 24>}, {transform_indices = @transform_3, window_bounds = array<i64: 512, 24>}]} {
    %c0 = arith.constant 0 : index
    %c0_0 = arith.constant 0 : index
    %0 = vector.load %arg1[%c0, %c0_0] : memref<512x3xf32, #tpu.memory_space<vmem>>, vector<512x3xf32>
    %1 = arith.truncf %0 : vector<512x3xf32> to vector<512x3xbf16>
    %c0_1 = arith.constant 0 : index
    %c0_2 = arith.constant 0 : index
    %2 = vector.load %arg2[%c0_1, %c0_2] : memref<3x24xbf16, #tpu.memory_space<vmem>>, vector<3x24xbf16>
    %cst = arith.constant dense<0.000000e+00> : vector<512x24xf32>
    %3 = tpu.matmul %1, %2, %cst {dimension_numbers = #tpu.dot_dimension_numbers<[1], [0], [0], [1], [0, 0, 1, 1], [], []>} : vector<512x3xbf16>, vector<3x24xbf16>, vector<512x24xf32> -> vector<512x24xf32>
    %c0_3 = arith.constant 0 : index
    %c0_4 = arith.constant 0 : index
    %4 = vector.load %arg3[%c0_3, %c0_4] : memref<1x24xf32, #tpu.memory_space<vmem>>, vector<1x24xf32>
    %5 = vector.broadcast %4 : vector<1x24xf32> to vector<512x24xf32>
    %6 = arith.addf %3, %5 : vector<512x24xf32>
    %cst_5 = arith.constant 0.000000e+00 : f32
    %7 = vector.broadcast %cst_5 : f32 to vector<512x24xf32>
    %8 = arith.maximumf %6, %7 : vector<512x24xf32>
    %9 = arith.truncf %8 : vector<512x24xf32> to vector<512x24xbf16>
    %c0_6 = arith.constant 0 : index
    %c0_7 = arith.constant 0 : index
    %10 = vector.load %arg4[%c0_6, %c0_7] : memref<512x24xbf16, #tpu.memory_space<vmem>>, vector<512x24xbf16>
    tpu.vector_store %arg4[%c0_6, %c0_7], %9 {strides = array<i32>} : memref<512x24xbf16, #tpu.memory_space<vmem>>, vector<512x24xbf16>,
    return
  }
  func.func @transform_0(%arg0: i32) -> (i32, i32) {
    %c0_i32 = arith.constant 0 : i32
    %c0_i32_0 = arith.constant 0 : i32
    return %arg0, %c0_i32 : i32, i32
  }
  func.func @transform_1(%arg0: i32) -> (i32, i32) {
    %c0_i32 = arith.constant 0 : i32
    %c0_i32_0 = arith.constant 0 : i32
    %c0_i32_1 = arith.constant 0 : i32
    return %c0_i32, %c0_i32_0 : i32, i32
  }
  func.func @transform_2(%arg0: i32) -> (i32, i32) {
    %c0_i32 = arith.constant 0 : i32
    %c0_i32_0 = arith.constant 0 : i32
    %c0_i32_1 = arith.constant 0 : i32
    return %c0_i32, %c0_i32_0 : i32, i32
  }
  func.func @transform_3(%arg0: i32) -> (i32, i32) {
    %c0_i32 = arith.constant 0 : i32
    %c0_i32_0 = arith.constant 0 : i32
    return %arg0, %c0_i32 : i32, i32
  }
}

</mosaic_0001>

<bundles_post_ra>
// kernel: tpu_custom_call.1
= control target key start
LH: loop header
LB: loop body
LE: loop exit
PB: predicated region body
PF: predicated region fallthrough
CT: control target
= control target key end

     0   :  { %vm216_vm0 = vcmask 1040384   ;;  %vm217_vm1 = vcmask 1041408   ;;  %v1164_v1 = vmov 65535   ;;  %vm119_vm2 = vcmask 23552   ;;  %s1737_s1 = inlined_call_operand.vmem [shape: bf16[3,24], index: 1, kind: input, shape index: {}]   ;;  %s1738_s0 = inlined_call_operand.vmem [shape: f32[512,3], index: 0, kind: input, shape index: {}]   ;;  %s1739_s2 = inlined_call_operand.vmem [shape: f32[1,24], index: 2, kind: input, shape index: {}]   ;;  %s1740_s3 = inlined_call_operand.vmem [shape: bf16[512,24], index: 3, kind: output, shape index: {}]  }
   0x1   :  { %v111_v0 = vld [vmem:[%s1737_s1] sm:$0x3]  ;;  %v218_v2 = vsel %vm216_vm0, 4294967295, %v1164_v1  ;;  %v16_v4 = vld [vmem:[%s1738_s0 + $0x8] sm:$0xff]  ;;  %v17_v9 = vld [vmem:[%s1738_s0 + $0x10] sm:$0xff]  ;;  %vm832_vm3 = vcmask 191488  }
   0x2   :  { %v15_v3 = vld [vmem:[%s1738_s0] sm:$0xff]  ;;  %v219_v5 = vsel %vm217_vm1, %v218_v2, 0  ;;  %v48_v8 = vld [vmem:[%s1738_s0 + $0x108] sm:$0xff]  ;;  %v18_v12 = vld [vmem:[%s1738_s0 + $0x18] sm:$0xff] }
   0x3   :  { %v79_v6 = vpack.c.bf16 %v16_v4, %v15_v3  ;;  %v47_v7 = vld [vmem:[%s1738_s0 + $0x100] sm:$0xff]  ;;  %v221_v10 = vand.u32 %v219_v5, %v111_v0  ;;  %v49_v13 = vld [vmem:[%s1738_s0 + $0x110] sm:$0xff]  ;;  %v50_v14 = vld [vmem:[%s1738_s0 + $0x118] sm:$0xff]  ;;  %v80_v18 = vpack.c.bf16 %v18_v12, %v17_v9 }
   0x4   :  { %v95_v11 = vpack.c.bf16 %v48_v8, %v47_v7  ;;  %v19_v15 = vld [vmem:[%s1738_s0 + $0x20] sm:$0xff]  ;;  %v20_v16 = vld [vmem:[%s1738_s0 + $0x28] sm:$0xff]  ;;  %v96_v19 = vpack.c.bf16 %v50_v14, %v49_v13  ;;  %v21_v23 = vld [vmem:[%s1738_s0 + $0x30] sm:$0xff] }
   0x5   :  { %1097 = vmatprep.mubr.msk.bf16.mxu0 %vm119_vm2, %v79_v6  ;;  %v51_v17 = vld [vmem:[%s1738_s0 + $0x120] sm:$0xff]  ;;  %1095 = vmatprep.subr.bf16.mxu0 %v221_v10  ;;  %v52_v20 = vld [vmem:[%s1738_s0 + $0x128] sm:$0xff]  ;;  %v81_v21 = vpack.c.bf16 %v20_v16, %v19_v15  ;;  %v22_v24 = vld [vmem:[%s1738_s0 + $0x38] sm:$0xff] }
   0x6   :  { %1161 = vmatprep.subr.bf16.mxu1 %v221_v10  ;;  %1096 = vmatpush3.bf16.msra.mxu0 %v221_v10  ;;  %v97_v22 = vpack.c.bf16 %v52_v20, %v51_v17  ;;  %v53_v25 = vld [vmem:[%s1738_s0 + $0x130] sm:$0xff]  ;;  %v54_v26 = vld [vmem:[%s1738_s0 + $0x138] sm:$0xff]  ;;  %v23_v27 = vld [vmem:[%s1738_s0 + $0x40] sm:$0xff]  ;;  %v82_v31 = vpack.c.bf16 %v22_v24, %v21_v23 }
   0x7   :  { %1162 = vmatpush3.bf16.msra.mxu1 %v221_v10  ;;  %1129 = vmatprep.mubr.msk.bf16.mxu1 %vm119_vm2, %v95_v11  ;;  %v24_v28 = vld [vmem:[%s1738_s0 + $0x48] sm:$0xff]  ;;  %v55_v29 = vld [vmem:[%s1738_s0 + $0x140] sm:$0xff]  ;;  %v98_v32 = vpack.c.bf16 %v54_v26, %v53_v25  ;;  %v25_v35 = vld [vmem:[%s1738_s0 + $0x50] sm:$0xff] }
   0x8   :  { %v56_v30 = vld [vmem:[%s1738_s0 + $0x148] sm:$0xff]  ;;  %v83_v33 = vpack.c.bf16 %v24_v28, %v23_v27  ;;  %v26_v36 = vld [vmem:[%s1738_s0 + $0x58] sm:$0xff]  ;;  %v57_v37 = vld [vmem:[%s1738_s0 + $0x150] sm:$0xff] }
   0x9   :  { %1098 = vmatmul.mubr.msk.bf16.vlgmr.msra.gmra.mrb[0].mxu0 %vm119_vm2, %v80_v18  ;;  %v99_v34 = vpack.c.bf16 %v56_v30, %v55_v29  ;;  %v58_v38 = vld [vmem:[%s1738_s0 + $0x158] sm:$0xff]  ;;  %v27_v39 = vld [vmem:[%s1738_s0 + $0x60] sm:$0xff]  ;;  %v28_v40 = vld [vmem:[%s1738_s0 + $0x68] sm:$0xff]  ;;  %v84_v43 = vpack.c.bf16 %v26_v36, %v25_v35 }
   0xa   :  { %1130 = vmatmul.mubr.msk.bf16.vlgmr.msra.gmra.mrb[0].mxu1 %vm119_vm2, %v96_v19  ;;  %1101 = vmatprep.mubr.msk.bf16.mxu0 %vm119_vm2, %v81_v21  ;;  %v59_v41 = vld [vmem:[%s1738_s0 + $0x160] sm:$0xff]  ;;  %v60_v42 = vld [vmem:[%s1738_s0 + $0x168] sm:$0xff]  ;;  %v100_v44 = vpack.c.bf16 %v58_v38, %v57_v37  ;;  %v85_v45 = vpack.c.bf16 %v28_v40, %v27_v39  ;;  %v29_v47 = vld [vmem:[%s1738_s0 + $0x70] sm:$0xff] }
   0xb   :  { %1133 = vmatprep.mubr.msk.bf16.mxu1 %vm119_vm2, %v97_v22  ;;  %v101_v46 = vpack.c.bf16 %v60_v42, %v59_v41  ;;  %v30_v48 = vld [vmem:[%s1738_s0 + $0x78] sm:$0xff]  ;;  %v61_v49 = vld [vmem:[%s1738_s0 + $0x170] sm:$0xff]  ;;  %v31_v51 = vld [vmem:[%s1738_s0 + $0x80] sm:$0xff] }
   0xc   :  { %v62_v50 = vld [vmem:[%s1738_s0 + $0x178] sm:$0xff]  ;;  %v32_v52 = vld [vmem:[%s1738_s0 + $0x88] sm:$0xff]  ;;  %v63_v53 = vld [vmem:[%s1738_s0 + $0x180] sm:$0xff]  ;;  %v86_v55 = vpack.c.bf16 %v30_v48, %v29_v47 }
   0xd   :  { %v64_v54 = vld [vmem:[%s1738_s0 + $0x188] sm:$0xff]  ;;  %v102_v56 = vpack.c.bf16 %v62_v50, %v61_v49  ;;  %v87_v57 = vpack.c.bf16 %v32_v52, %v31_v51  ;;  %v33_v59 = vld [vmem:[%s1738_s0 + $0x90] sm:$0xff]  ;;  %v34_v60 = vld [vmem:[%s1738_s0 + $0x98] sm:$0xff] }
   0xe   :  { %v103_v58 = vpack.c.bf16 %v64_v54, %v63_v53  ;;  %v65_v61 = vld [vmem:[%s1738_s0 + $0x190] sm:$0xff]  ;;  %v66_v62 = vld [vmem:[%s1738_s0 + $0x198] sm:$0xff]  ;;  %v35_v63 = vld [vmem:[%s1738_s0 + $0xa0] sm:$0xff]  ;;  %v88_v3 = vpack.c.bf16 %v34_v60, %v33_v59 }
   0xf   :  { %v36_v0 = vld [vmem:[%s1738_s0 + $0xa8] sm:$0xff]  ;;  %v67_v1 = vld [vmem:[%s1738_s0 + $0x1a0] sm:$0xff]  ;;  %v104_v4 = vpack.c.bf16 %v66_v62, %v65_v61  ;;  %v37_v7 = vld [vmem:[%s1738_s0 + $0xb0] sm:$0xff] }
  0x10   :  { %v68_v2 = vld [vmem:[%s1738_s0 + $0x1a8] sm:$0xff]  ;;  %v89_v5 = vpack.c.bf16 %v36_v0, %v35_v63  ;;  %v38_v8 = vld [vmem:[%s1738_s0 + $0xb8] sm:$0xff]  ;;  %v69_v9 = vld [vmem:[%s1738_s0 + $0x1b0] sm:$0xff] }
  0x11   :  { %1102 = vmatmul.mubr.msk.bf16.gmra.mrb[4].mxu0 %vm119_vm2, %v82_v31  ;;  %v105_v6 = vpack.c.bf16 %v68_v2, %v67_v1  ;;  %v70_v10 = vld [vmem:[%s1738_s0 + $0x1b8] sm:$0xff]  ;;  %v39_v11 = vld [vmem:[%s1738_s0 + $0xc0] sm:$0xff]  ;;  %v40_v12 = vld [vmem:[%s1738_s0 + $0xc8] sm:$0xff]  ;;  %v90_v15 = vpack.c.bf16 %v38_v8, %v37_v7 }
  0x12   :  { %1134 = vmatmul.mubr.msk.bf16.gmra.mrb[4].mxu1 %vm119_vm2, %v98_v32  ;;  %1105 = vmatprep.mubr.msk.bf16.mxu0 %vm119_vm2, %v83_v33  ;;  %v71_v13 = vld [vmem:[%s1738_s0 + $0x1c0] sm:$0xff]  ;;  %v72_v14 = vld [vmem:[%s1738_s0 + $0x1c8] sm:$0xff]  ;;  %v106_v16 = vpack.c.bf16 %v70_v10, %v69_v9  ;;  %v91_v17 = vpack.c.bf16 %v40_v12, %v39_v11  ;;  %v41_v19 = vld [vmem:[%s1738_s0 + $0xd0] sm:$0xff] }
  0x13   :  { %1137 = vmatprep.mubr.msk.bf16.mxu1 %vm119_vm2, %v99_v34  ;;  %v107_v18 = vpack.c.bf16 %v72_v14, %v71_v13  ;;  %v42_v20 = vld [vmem:[%s1738_s0 + $0xd8] sm:$0xff]  ;;  %v73_v21 = vld [vmem:[%s1738_s0 + $0x1d0] sm:$0xff]  ;;  %v43_v23 = vld [vmem:[%s1738_s0 + $0xe0] sm:$0xff] }
  0x14   :  { %v74_v22 = vld [vmem:[%s1738_s0 + $0x1d8] sm:$0xff]  ;;  %v44_v24 = vld [vmem:[%s1738_s0 + $0xe8] sm:$0xff]  ;;  %v75_v25 = vld [vmem:[%s1738_s0 + $0x1e0] sm:$0xff]  ;;  %v92_v27 = vpack.c.bf16 %v42_v20, %v41_v19 }
  0x15   :  { %v76_v26 = vld [vmem:[%s1738_s0 + $0x1e8] sm:$0xff]  ;;  %v108_v28 = vpack.c.bf16 %v74_v22, %v73_v21  ;;  %v93_v29 = vpack.c.bf16 %v44_v24, %v43_v23  ;;  %v45_v31 = vld [vmem:[%s1738_s0 + $0xf0] sm:$0xff]  ;;  %v46_v32 = vld [vmem:[%s1738_s0 + $0xf8] sm:$0xff] }
  0x16   :  { %v109_v30 = vpack.c.bf16 %v76_v26, %v75_v25  ;;  %v77_v33 = vld [vmem:[%s1738_s0 + $0x1f0] sm:$0xff]  ;;  %v78_v34 = vld [vmem:[%s1738_s0 + $0x1f8] sm:$0xff]  ;;  %v94_v35 = vpack.c.bf16 %v46_v32, %v45_v31  ;;  %v1415_v37 = vld [vmem:[%s1739_s2] ss:$0 sm:$0xff] }
  0x17   :  { %v110_v36 = vpack.c.bf16 %v78_v34, %v77_v33 }
  0x19   :  { %1106 = vmatmul.mubr.msk.bf16.gmra.mrb[8].mxu0 %vm119_vm2, %v84_v43 }
  0x1a   :  { %1138 = vmatmul.mubr.msk.bf16.gmra.mrb[8].mxu1 %vm119_vm2, %v100_v44  ;;  %1109 = vmatprep.mubr.msk.bf16.mxu0 %vm119_vm2, %v85_v45 }
  0x1b   :  { %1141 = vmatprep.mubr.msk.bf16.mxu1 %vm119_vm2, %v101_v46 }
  0x21   :  { %1110 = vmatmul.mubr.msk.bf16.gmra.mrb[12].mxu0 %vm119_vm2, %v86_v55 }
  0x22   :  { %1142 = vmatmul.mubr.msk.bf16.gmra.mrb[12].mxu1 %vm119_vm2, %v102_v56  ;;  %1113 = vmatprep.mubr.msk.bf16.mxu0 %vm119_vm2, %v87_v57 }
  0x23   :  { %1145 = vmatprep.mubr.msk.bf16.mxu1 %vm119_vm2, %v103_v58 }
  0x29   :  { %1114 = vmatmul.mubr.msk.bf16.gmra.mrb[16].mxu0 %vm119_vm2, %v88_v3 }
  0x2a   :  { %1146 = vmatmul.mubr.msk.bf16.gmra.mrb[16].mxu1 %vm119_vm2, %v104_v4  ;;  %1117 = vmatprep.mubr.msk.bf16.mxu0 %vm119_vm2, %v89_v5 }
  0x2b   :  { %1149 = vmatprep.mubr.msk.bf16.mxu1 %vm119_vm2, %v105_v6 }
  0x31   :  { %1118 = vmatmul.mubr.msk.bf16.gmra.mrb[20].mxu0 %vm119_vm2, %v90_v15 }
  0x32   :  { %1150 = vmatmul.mubr.msk.bf16.gmra.mrb[20].mxu1 %vm119_vm2, %v106_v16  ;;  %1121 = vmatprep.mubr.msk.bf16.mxu0 %vm119_vm2, %v91_v17 }
  0x33   :  { %1153 = vmatprep.mubr.msk.bf16.mxu1 %vm119_vm2, %v107_v18 }
  0x39   :  { %1122 = vmatmul.mubr.msk.bf16.gmra.mrb[24].mxu0 %vm119_vm2, %v92_v27 }
  0x3a   :  { %1154 = vmatmul.mubr.msk.bf16.gmra.mrb[24].mxu1 %vm119_vm2, %v108_v28  ;;  %1125 = vmatprep.mubr.msk.bf16.mxu0 %vm119_vm2, %v93_v29 }
  0x3b   :  { %1157 = vmatprep.mubr.msk.bf16.mxu1 %vm119_vm2, %v109_v30 }
  0x41   :  { %1126 = vmatmul.mubr.msk.bf16.gmra.mrb[28].mxu0 %vm119_vm2, %v94_v35 }
  0x42   :  { %1158 = vmatmul.mubr.msk.bf16.gmra.mrb[28].mxu1 %vm119_vm2, %v110_v36 }
  0xdc   :  { %v1099_v38 = vpop.f32.mrb[0].mxu0 }
  0xdd   :  { %v1131_v39 = vpop.f32.mrb[0].mxu1  ;;  %v266_v40 = vadd.f32 %v1099_v38, %v1415_v37  ;;  %v257_v42 = vpop.f32.mrb[1].mxu0 }
  0xde   :  { %v394_v41 = vadd.f32 %v1131_v39, %v1415_v37  ;;  %v385_v43 = vpop.f32.mrb[1].mxu1  ;;  %v258_v44 = vadd.f32 %v1415_v37, %v257_v42  ;;  %v1100_v46 = vpop.f32.mrb[2].mxu0 }
  0xdf   :  { %v386_v45 = vadd.f32 %v1415_v37, %v385_v43  ;;  %v1132_v47 = vpop.f32.mrb[2].mxu1  ;;  %v514_v48 = vmax.f32 %v266_v40, 0.0  ;;  %v269_v50 = vadd.f32 %v1100_v46, %v1415_v37  ;;  %v260_v52 = vpop.f32.mrb[3].mxu0 }
  0xe0   :  { %v546_v49 = vmax.f32 %v394_v41, 0.0  ;;  %v397_v51 = vadd.f32 %v1132_v47, %v1415_v37  ;;  %v388_v53 = vpop.f32.mrb[3].mxu1  ;;  %v512_v54 = vmax.f32 %v258_v44, 0.0  ;;  %v261_v56 = vadd.f32 %v1415_v37, %v260_v52 }
  0xe1   :  { %v544_v55 = vmax.f32 %v386_v45, 0.0  ;;  %v389_v57 = vadd.f32 %v1415_v37, %v388_v53  ;;  %v1000_v58 = vpack.c.bf16 %v514_v48, %v514_v48  ;;  %v515_v60 = vmax.f32 %v269_v50, 0.0 }
  0xe2   :  { %v1032_v59 = vpack.c.bf16 %v546_v49, %v546_v49  ;;  %v547_v61 = vmax.f32 %v397_v51, 0.0  ;;  %v998_v62 = vpack.c.bf16 %v512_v54, %v512_v54  ;;  %v513_v0 = vmax.f32 %v261_v56, 0.0 }
  0xe3   :  { %v1030_v63 = vpack.c.bf16 %v544_v55, %v544_v55  ;;  %v545_v1 = vmax.f32 %v389_v57, 0.0  ;;  %835 = vst.msk [vmem:[%s1740_s3 + $0x8] sm:$0xf] %vm832_vm3, %v1000_v58  ;;  %v1001_v2 = vpack.c.bf16 %v515_v60, %v515_v60 }
  0xe4   :  { %867 = vst.msk [vmem:[%s1740_s3 + $0x88] sm:$0xf] %vm832_vm3, %v1032_v59  ;;  %v1033_v3 = vpack.c.bf16 %v547_v61, %v547_v61  ;;  %833 = vst.msk [vmem:[%s1740_s3] sm:$0xf] %vm832_vm3, %v998_v62  ;;  %v999_v4 = vpack.c.bf16 %v513_v0, %v513_v0  ;;  %v1103_v6 = vpop.f32.mrb[4].mxu0 }
  0xe5   :  { %865 = vst.msk [vmem:[%s1740_s3 + $0x80] sm:$0xf] %vm832_vm3, %v1030_v63  ;;  %v1031_v5 = vpack.c.bf16 %v545_v1, %v545_v1  ;;  %v1135_v7 = vpop.f32.mrb[4].mxu1  ;;  %836 = vst.msk [vmem:[%s1740_s3 + $0xc] sm:$0xf] %vm832_vm3, %v1001_v2  ;;  %v282_v8 = vadd.f32 %v1103_v6, %v1415_v37  ;;  %v273_v10 = vpop.f32.mrb[5].mxu0 }
  0xe6   :  { %868 = vst.msk [vmem:[%s1740_s3 + $0x8c] sm:$0xf] %vm832_vm3, %v1033_v3  ;;  %v410_v9 = vadd.f32 %v1135_v7, %v1415_v37  ;;  %v401_v11 = vpop.f32.mrb[5].mxu1  ;;  %834 = vst.msk [vmem:[%s1740_s3 + $0x4] sm:$0xf] %vm832_vm3, %v999_v4  ;;  %v274_v12 = vadd.f32 %v1415_v37, %v273_v10  ;;  %v1104_v14 = vpop.f32.mrb[6].mxu0 }
  0xe7   :  { %866 = vst.msk [vmem:[%s1740_s3 + $0x84] sm:$0xf] %vm832_vm3, %v1031_v5  ;;  %v402_v13 = vadd.f32 %v1415_v37, %v401_v11  ;;  %v1136_v15 = vpop.f32.mrb[6].mxu1  ;;  %v518_v16 = vmax.f32 %v282_v8, 0.0  ;;  %v285_v18 = vadd.f32 %v1104_v14, %v1415_v37  ;;  %v276_v20 = vpop.f32.mrb[7].mxu0 }
  0xe8   :  { %v550_v17 = vmax.f32 %v410_v9, 0.0  ;;  %v413_v19 = vadd.f32 %v1136_v15, %v1415_v37  ;;  %v404_v21 = vpop.f32.mrb[7].mxu1  ;;  %v516_v22 = vmax.f32 %v274_v12, 0.0  ;;  %v277_v24 = vadd.f32 %v1415_v37, %v276_v20 }
  0xe9   :  { %v548_v23 = vmax.f32 %v402_v13, 0.0  ;;  %v405_v25 = vadd.f32 %v1415_v37, %v404_v21  ;;  %v1004_v26 = vpack.c.bf16 %v518_v16, %v518_v16  ;;  %v519_v28 = vmax.f32 %v285_v18, 0.0 }
  0xea   :  { %v1036_v27 = vpack.c.bf16 %v550_v17, %v550_v17  ;;  %v551_v29 = vmax.f32 %v413_v19, 0.0  ;;  %v1002_v30 = vpack.c.bf16 %v516_v22, %v516_v22  ;;  %v517_v32 = vmax.f32 %v277_v24, 0.0 }
  0xeb   :  { %v1034_v31 = vpack.c.bf16 %v548_v23, %v548_v23  ;;  %v549_v33 = vmax.f32 %v405_v25, 0.0  ;;  %839 = vst.msk [vmem:[%s1740_s3 + $0x18] sm:$0xf] %vm832_vm3, %v1004_v26  ;;  %v1005_v34 = vpack.c.bf16 %v519_v28, %v519_v28 }
  0xec   :  { %871 = vst.msk [vmem:[%s1740_s3 + $0x98] sm:$0xf] %vm832_vm3, %v1036_v27  ;;  %v1037_v35 = vpack.c.bf16 %v551_v29, %v551_v29  ;;  %837 = vst.msk [vmem:[%s1740_s3 + $0x10] sm:$0xf] %vm832_vm3, %v1002_v30  ;;  %v1003_v36 = vpack.c.bf16 %v517_v32, %v517_v32  ;;  %v1107_v39 = vpop.f32.mrb[8].mxu0 }
  0xed   :  { %869 = vst.msk [vmem:[%s1740_s3 + $0x90] sm:$0xf] %vm832_vm3, %v1034_v31  ;;  %v1035_v38 = vpack.c.bf16 %v549_v33, %v549_v33  ;;  %v1139_v40 = vpop.f32.mrb[8].mxu1  ;;  %840 = vst.msk [vmem:[%s1740_s3 + $0x1c] sm:$0xf] %vm832_vm3, %v1005_v34  ;;  %v298_v41 = vadd.f32 %v1107_v39, %v1415_v37  ;;  %v289_v43 = vpop.f32.mrb[9].mxu0 }
  0xee   :  { %872 = vst.msk [vmem:[%s1740_s3 + $0x9c] sm:$0xf] %vm832_vm3, %v1037_v35  ;;  %v426_v42 = vadd.f32 %v1139_v40, %v1415_v37  ;;  %v417_v44 = vpop.f32.mrb[9].mxu1  ;;  %838 = vst.msk [vmem:[%s1740_s3 + $0x14] sm:$0xf] %vm832_vm3, %v1003_v36  ;;  %v290_v45 = vadd.f32 %v1415_v37, %v289_v43  ;;  %v1108_v47 = vpop.f32.mrb[10].mxu0 }
  0xef   :  { %870 = vst.msk [vmem:[%s1740_s3 + $0x94] sm:$0xf] %vm832_vm3, %v1035_v38  ;;  %v418_v46 = vadd.f32 %v1415_v37, %v417_v44  ;;  %v1140_v48 = vpop.f32.mrb[10].mxu1  ;;  %v522_v49 = vmax.f32 %v298_v41, 0.0  ;;  %v301_v51 = vadd.f32 %v1108_v47, %v1415_v37  ;;  %v292_v53 = vpop.f32.mrb[11].mxu0 }
  0xf0   :  { %v554_v50 = vmax.f32 %v426_v42, 0.0  ;;  %v429_v52 = vadd.f32 %v1140_v48, %v1415_v37  ;;  %v420_v54 = vpop.f32.mrb[11].mxu1  ;;  %v520_v55 = vmax.f32 %v290_v45, 0.0  ;;  %v293_v57 = vadd.f32 %v1415_v37, %v292_v53 }
  0xf1   :  { %v552_v56 = vmax.f32 %v418_v46, 0.0  ;;  %v421_v58 = vadd.f32 %v1415_v37, %v420_v54  ;;  %v1008_v59 = vpack.c.bf16 %v522_v49, %v522_v49  ;;  %v523_v61 = vmax.f32 %v301_v51, 0.0 }
  0xf2   :  { %v1040_v60 = vpack.c.bf16 %v554_v50, %v554_v50  ;;  %v555_v62 = vmax.f32 %v429_v52, 0.0  ;;  %v1006_v63 = vpack.c.bf16 %v520_v55, %v520_v55  ;;  %v521_v1 = vmax.f32 %v293_v57, 0.0 }
  0xf3   :  { %v1038_v0 = vpack.c.bf16 %v552_v56, %v552_v56  ;;  %v553_v2 = vmax.f32 %v421_v58, 0.0  ;;  %843 = vst.msk [vmem:[%s1740_s3 + $0x28] sm:$0xf] %vm832_vm3, %v1008_v59  ;;  %v1009_v3 = vpack.c.bf16 %v523_v61, %v523_v61 }
  0xf4   :  { %875 = vst.msk [vmem:[%s1740_s3 + $0xa8] sm:$0xf] %vm832_vm3, %v1040_v60  ;;  %v1041_v4 = vpack.c.bf16 %v555_v62, %v555_v62  ;;  %841 = vst.msk [vmem:[%s1740_s3 + $0x20] sm:$0xf] %vm832_vm3, %v1006_v63  ;;  %v1007_v5 = vpack.c.bf16 %v521_v1, %v521_v1  ;;  %v1111_v7 = vpop.f32.mrb[12].mxu0 }
  0xf5   :  { %873 = vst.msk [vmem:[%s1740_s3 + $0xa0] sm:$0xf] %vm832_vm3, %v1038_v0  ;;  %v1039_v6 = vpack.c.bf16 %v553_v2, %v553_v2  ;;  %v1143_v8 = vpop.f32.mrb[12].mxu1  ;;  %844 = vst.msk [vmem:[%s1740_s3 + $0x2c] sm:$0xf] %vm832_vm3, %v1009_v3  ;;  %v314_v9 = vadd.f32 %v1111_v7, %v1415_v37  ;;  %v305_v11 = vpop.f32.mrb[13].mxu0 }
  0xf6   :  { %876 = vst.msk [vmem:[%s1740_s3 + $0xac] sm:$0xf] %vm832_vm3, %v1041_v4  ;;  %v442_v10 = vadd.f32 %v1143_v8, %v1415_v37  ;;  %v433_v12 = vpop.f32.mrb[13].mxu1  ;;  %842 = vst.msk [vmem:[%s1740_s3 + $0x24] sm:$0xf] %vm832_vm3, %v1007_v5  ;;  %v306_v13 = vadd.f32 %v1415_v37, %v305_v11  ;;  %v1112_v15 = vpop.f32.mrb[14].mxu0 }
  0xf7   :  { %874 = vst.msk [vmem:[%s1740_s3 + $0xa4] sm:$0xf] %vm832_vm3, %v1039_v6  ;;  %v434_v14 = vadd.f32 %v1415_v37, %v433_v12  ;;  %v1144_v16 = vpop.f32.mrb[14].mxu1  ;;  %v526_v17 = vmax.f32 %v314_v9, 0.0  ;;  %v317_v19 = vadd.f32 %v1112_v15, %v1415_v37  ;;  %v308_v21 = vpop.f32.mrb[15].mxu0 }
  0xf8   :  { %v558_v18 = vmax.f32 %v442_v10, 0.0  ;;  %v445_v20 = vadd.f32 %v1144_v16, %v1415_v37  ;;  %v436_v22 = vpop.f32.mrb[15].mxu1  ;;  %v524_v23 = vmax.f32 %v306_v13, 0.0  ;;  %v309_v25 = vadd.f32 %v1415_v37, %v308_v21 }
  0xf9   :  { %v556_v24 = vmax.f32 %v434_v14, 0.0  ;;  %v437_v26 = vadd.f32 %v1415_v37, %v436_v22  ;;  %v1012_v27 = vpack.c.bf16 %v526_v17, %v526_v17  ;;  %v527_v29 = vmax.f32 %v317_v19, 0.0 }
  0xfa   :  { %v1044_v28 = vpack.c.bf16 %v558_v18, %v558_v18  ;;  %v559_v30 = vmax.f32 %v445_v20, 0.0  ;;  %v1010_v31 = vpack.c.bf16 %v524_v23, %v524_v23  ;;  %v525_v33 = vmax.f32 %v309_v25, 0.0 }
  0xfb   :  { %v1042_v32 = vpack.c.bf16 %v556_v24, %v556_v24  ;;  %v557_v34 = vmax.f32 %v437_v26, 0.0  ;;  %847 = vst.msk [vmem:[%s1740_s3 + $0x38] sm:$0xf] %vm832_vm3, %v1012_v27  ;;  %v1013_v35 = vpack.c.bf16 %v527_v29, %v527_v29 }
  0xfc   :  { %879 = vst.msk [vmem:[%s1740_s3 + $0xb8] sm:$0xf] %vm832_vm3, %v1044_v28  ;;  %v1045_v36 = vpack.c.bf16 %v559_v30, %v559_v30  ;;  %845 = vst.msk [vmem:[%s1740_s3 + $0x30] sm:$0xf] %vm832_vm3, %v1010_v31  ;;  %v1011_v38 = vpack.c.bf16 %v525_v33, %v525_v33  ;;  %v1115_v40 = vpop.f32.mrb[16].mxu0 }
  0xfd   :  { %877 = vst.msk [vmem:[%s1740_s3 + $0xb0] sm:$0xf] %vm832_vm3, %v1042_v32  ;;  %v1043_v39 = vpack.c.bf16 %v557_v34, %v557_v34  ;;  %v1147_v41 = vpop.f32.mrb[16].mxu1  ;;  %848 = vst.msk [vmem:[%s1740_s3 + $0x3c] sm:$0xf] %vm832_vm3, %v1013_v35  ;;  %v330_v42 = vadd.f32 %v1115_v40, %v1415_v37  ;;  %v321_v44 = vpop.f32.mrb[17].mxu0 }
  0xfe   :  { %880 = vst.msk [vmem:[%s1740_s3 + $0xbc] sm:$0xf] %vm832_vm3, %v1045_v36  ;;  %v458_v43 = vadd.f32 %v1147_v41, %v1415_v37  ;;  %v449_v45 = vpop.f32.mrb[17].mxu1  ;;  %846 = vst.msk [vmem:[%s1740_s3 + $0x34] sm:$0xf] %vm832_vm3, %v1011_v38  ;;  %v322_v46 = vadd.f32 %v1415_v37, %v321_v44  ;;  %v1116_v48 = vpop.f32.mrb[18].mxu0 }
  0xff   :  { %878 = vst.msk [vmem:[%s1740_s3 + $0xb4] sm:$0xf] %vm832_vm3, %v1043_v39  ;;  %v450_v47 = vadd.f32 %v1415_v37, %v449_v45  ;;  %v1148_v49 = vpop.f32.mrb[18].mxu1  ;;  %v530_v50 = vmax.f32 %v330_v42, 0.0  ;;  %v333_v52 = vadd.f32 %v1116_v48, %v1415_v37  ;;  %v324_v54 = vpop.f32.mrb[19].mxu0 }
 0x100   :  { %v562_v51 = vmax.f32 %v458_v43, 0.0  ;;  %v461_v53 = vadd.f32 %v1148_v49, %v1415_v37  ;;  %v452_v55 = vpop.f32.mrb[19].mxu1  ;;  %v528_v56 = vmax.f32 %v322_v46, 0.0  ;;  %v325_v58 = vadd.f32 %v1415_v37, %v324_v54 }
 0x101   :  { %v560_v57 = vmax.f32 %v450_v47, 0.0  ;;  %v453_v59 = vadd.f32 %v1415_v37, %v452_v55  ;;  %v1016_v60 = vpack.c.bf16 %v530_v50, %v530_v50  ;;  %v531_v62 = vmax.f32 %v333_v52, 0.0 }
 0x102   :  { %v1048_v61 = vpack.c.bf16 %v562_v51, %v562_v51  ;;  %v563_v63 = vmax.f32 %v461_v53, 0.0  ;;  %v1014_v0 = vpack.c.bf16 %v528_v56, %v528_v56  ;;  %v529_v2 = vmax.f32 %v325_v58, 0.0 }
 0x103   :  { %v1046_v1 = vpack.c.bf16 %v560_v57, %v560_v57  ;;  %v561_v3 = vmax.f32 %v453_v59, 0.0  ;;  %851 = vst.msk [vmem:[%s1740_s3 + $0x48] sm:$0xf] %vm832_vm3, %v1016_v60  ;;  %v1017_v4 = vpack.c.bf16 %v531_v62, %v531_v62 }
 0x104   :  { %883 = vst.msk [vmem:[%s1740_s3 + $0xc8] sm:$0xf] %vm832_vm3, %v1048_v61  ;;  %v1049_v5 = vpack.c.bf16 %v563_v63, %v563_v63  ;;  %849 = vst.msk [vmem:[%s1740_s3 + $0x40] sm:$0xf] %vm832_vm3, %v1014_v0  ;;  %v1015_v6 = vpack.c.bf16 %v529_v2, %v529_v2  ;;  %v1119_v8 = vpop.f32.mrb[20].mxu0 }
 0x105   :  { %881 = vst.msk [vmem:[%s1740_s3 + $0xc0] sm:$0xf] %vm832_vm3, %v1046_v1  ;;  %v1047_v7 = vpack.c.bf16 %v561_v3, %v561_v3  ;;  %v1151_v9 = vpop.f32.mrb[20].mxu1  ;;  %852 = vst.msk [vmem:[%s1740_s3 + $0x4c] sm:$0xf] %vm832_vm3, %v1017_v4  ;;  %v346_v10 = vadd.f32 %v1119_v8, %v1415_v37  ;;  %v337_v12 = vpop.f32.mrb[21].mxu0 }
 0x106   :  { %884 = vst.msk [vmem:[%s1740_s3 + $0xcc] sm:$0xf] %vm832_vm3, %v1049_v5  ;;  %v474_v11 = vadd.f32 %v1151_v9, %v1415_v37  ;;  %v465_v13 = vpop.f32.mrb[21].mxu1  ;;  %850 = vst.msk [vmem:[%s1740_s3 + $0x44] sm:$0xf] %vm832_vm3, %v1015_v6  ;;  %v338_v14 = vadd.f32 %v1415_v37, %v337_v12  ;;  %v1120_v16 = vpop.f32.mrb[22].mxu0 }
 0x107   :  { %882 = vst.msk [vmem:[%s1740_s3 + $0xc4] sm:$0xf] %vm832_vm3, %v1047_v7  ;;  %v466_v15 = vadd.f32 %v1415_v37, %v465_v13  ;;  %v1152_v17 = vpop.f32.mrb[22].mxu1  ;;  %v534_v18 = vmax.f32 %v346_v10, 0.0  ;;  %v349_v20 = vadd.f32 %v1120_v16, %v1415_v37  ;;  %v340_v22 = vpop.f32.mrb[23].mxu0 }
 0x108   :  { %v566_v19 = vmax.f32 %v474_v11, 0.0  ;;  %v477_v21 = vadd.f32 %v1152_v17, %v1415_v37  ;;  %v468_v23 = vpop.f32.mrb[23].mxu1  ;;  %v532_v24 = vmax.f32 %v338_v14, 0.0  ;;  %v341_v26 = vadd.f32 %v1415_v37, %v340_v22 }
 0x109   :  { %v564_v25 = vmax.f32 %v466_v15, 0.0  ;;  %v469_v27 = vadd.f32 %v1415_v37, %v468_v23  ;;  %v1020_v28 = vpack.c.bf16 %v534_v18, %v534_v18  ;;  %v535_v30 = vmax.f32 %v349_v20, 0.0 }
 0x10a   :  { %v1052_v29 = vpack.c.bf16 %v566_v19, %v566_v19  ;;  %v567_v31 = vmax.f32 %v477_v21, 0.0  ;;  %v1018_v32 = vpack.c.bf16 %v532_v24, %v532_v24  ;;  %v533_v34 = vmax.f32 %v341_v26, 0.0 }
 0x10b   :  { %v1050_v33 = vpack.c.bf16 %v564_v25, %v564_v25  ;;  %v565_v35 = vmax.f32 %v469_v27, 0.0  ;;  %855 = vst.msk [vmem:[%s1740_s3 + $0x58] sm:$0xf] %vm832_vm3, %v1020_v28  ;;  %v1021_v36 = vpack.c.bf16 %v535_v30, %v535_v30 }
 0x10c   :  { %887 = vst.msk [vmem:[%s1740_s3 + $0xd8] sm:$0xf] %vm832_vm3, %v1052_v29  ;;  %v1053_v38 = vpack.c.bf16 %v567_v31, %v567_v31  ;;  %853 = vst.msk [vmem:[%s1740_s3 + $0x50] sm:$0xf] %vm832_vm3, %v1018_v32  ;;  %v1019_v39 = vpack.c.bf16 %v533_v34, %v533_v34  ;;  %v1123_v41 = vpop.f32.mrb[24].mxu0 }
 0x10d   :  { %885 = vst.msk [vmem:[%s1740_s3 + $0xd0] sm:$0xf] %vm832_vm3, %v1050_v33  ;;  %v1051_v40 = vpack.c.bf16 %v565_v35, %v565_v35  ;;  %v1155_v42 = vpop.f32.mrb[24].mxu1  ;;  %856 = vst.msk [vmem:[%s1740_s3 + $0x5c] sm:$0xf] %vm832_vm3, %v1021_v36  ;;  %v362_v43 = vadd.f32 %v1123_v41, %v1415_v37  ;;  %v353_v45 = vpop.f32.mrb[25].mxu0 }
 0x10e   :  { %888 = vst.msk [vmem:[%s1740_s3 + $0xdc] sm:$0xf] %vm832_vm3, %v1053_v38  ;;  %v490_v44 = vadd.f32 %v1155_v42, %v1415_v37  ;;  %v481_v46 = vpop.f32.mrb[25].mxu1  ;;  %854 = vst.msk [vmem:[%s1740_s3 + $0x54] sm:$0xf] %vm832_vm3, %v1019_v39  ;;  %v354_v47 = vadd.f32 %v1415_v37, %v353_v45  ;;  %v1124_v49 = vpop.f32.mrb[26].mxu0 }
 0x10f   :  { %886 = vst.msk [vmem:[%s1740_s3 + $0xd4] sm:$0xf] %vm832_vm3, %v1051_v40  ;;  %v482_v48 = vadd.f32 %v1415_v37, %v481_v46  ;;  %v1156_v50 = vpop.f32.mrb[26].mxu1  ;;  %v538_v51 = vmax.f32 %v362_v43, 0.0  ;;  %v365_v53 = vadd.f32 %v1124_v49, %v1415_v37  ;;  %v356_v55 = vpop.f32.mrb[27].mxu0 }
 0x110   :  { %v570_v52 = vmax.f32 %v490_v44, 0.0  ;;  %v493_v54 = vadd.f32 %v1156_v50, %v1415_v37  ;;  %v484_v56 = vpop.f32.mrb[27].mxu1  ;;  %v536_v57 = vmax.f32 %v354_v47, 0.0  ;;  %v357_v59 = vadd.f32 %v1415_v37, %v356_v55 }
 0x111   :  { %v568_v58 = vmax.f32 %v482_v48, 0.0  ;;  %v485_v60 = vadd.f32 %v1415_v37, %v484_v56  ;;  %v1024_v61 = vpack.c.bf16 %v538_v51, %v538_v51  ;;  %v539_v63 = vmax.f32 %v365_v53, 0.0 }
 0x112   :  { %v1056_v62 = vpack.c.bf16 %v570_v52, %v570_v52  ;;  %v571_v0 = vmax.f32 %v493_v54, 0.0  ;;  %v1022_v1 = vpack.c.bf16 %v536_v57, %v536_v57  ;;  %v537_v3 = vmax.f32 %v357_v59, 0.0 }
 0x113   :  { %v1054_v2 = vpack.c.bf16 %v568_v58, %v568_v58  ;;  %v569_v4 = vmax.f32 %v485_v60, 0.0  ;;  %859 = vst.msk [vmem:[%s1740_s3 + $0x68] sm:$0xf] %vm832_vm3, %v1024_v61  ;;  %v1025_v5 = vpack.c.bf16 %v539_v63, %v539_v63 }
 0x114   :  { %891 = vst.msk [vmem:[%s1740_s3 + $0xe8] sm:$0xf] %vm832_vm3, %v1056_v62  ;;  %v1057_v6 = vpack.c.bf16 %v571_v0, %v571_v0  ;;  %857 = vst.msk [vmem:[%s1740_s3 + $0x60] sm:$0xf] %vm832_vm3, %v1022_v1  ;;  %v1023_v7 = vpack.c.bf16 %v537_v3, %v537_v3  ;;  %v1127_v9 = vpop.f32.mrb[28].mxu0 }
 0x115   :  { %889 = vst.msk [vmem:[%s1740_s3 + $0xe0] sm:$0xf] %vm832_vm3, %v1054_v2  ;;  %v1055_v8 = vpack.c.bf16 %v569_v4, %v569_v4  ;;  %v1159_v10 = vpop.f32.mrb[28].mxu1  ;;  %860 = vst.msk [vmem:[%s1740_s3 + $0x6c] sm:$0xf] %vm832_vm3, %v1025_v5  ;;  %v378_v11 = vadd.f32 %v1127_v9, %v1415_v37  ;;  %v369_v13 = vpop.f32.mrb[29].mxu0 }
 0x116   :  { %892 = vst.msk [vmem:[%s1740_s3 + $0xec] sm:$0xf] %vm832_vm3, %v1057_v6  ;;  %v506_v12 = vadd.f32 %v1159_v10, %v1415_v37  ;;  %v497_v14 = vpop.f32.mrb[29].mxu1  ;;  %858 = vst.msk [vmem:[%s1740_s3 + $0x64] sm:$0xf] %vm832_vm3, %v1023_v7  ;;  %v370_v15 = vadd.f32 %v1415_v37, %v369_v13  ;;  %v1128_v17 = vpop.f32.mrb[30].mxu0 }
 0x117   :  { %890 = vst.msk [vmem:[%s1740_s3 + $0xe4] sm:$0xf] %vm832_vm3, %v1055_v8  ;;  %v498_v16 = vadd.f32 %v1415_v37, %v497_v14  ;;  %v1160_v18 = vpop.f32.mrb[30].mxu1  ;;  %v542_v19 = vmax.f32 %v378_v11, 0.0  ;;  %v381_v21 = vadd.f32 %v1128_v17, %v1415_v37  ;;  %v372_v23 = vpop.f32.mrb[31].mxu0 }
 0x118   :  { %v574_v20 = vmax.f32 %v506_v12, 0.0  ;;  %v509_v22 = vadd.f32 %v1160_v18, %v1415_v37  ;;  %v500_v24 = vpop.f32.mrb[31].mxu1  ;;  %v540_v25 = vmax.f32 %v370_v15, 0.0  ;;  %v373_v27 = vadd.f32 %v1415_v37, %v372_v23 }
 0x119   :  { %v572_v26 = vmax.f32 %v498_v16, 0.0  ;;  %v501_v28 = vadd.f32 %v1415_v37, %v500_v24  ;;  %v1028_v29 = vpack.c.bf16 %v542_v19, %v542_v19  ;;  %v543_v31 = vmax.f32 %v381_v21, 0.0 }
 0x11a   :  { %v1060_v30 = vpack.c.bf16 %v574_v20, %v574_v20  ;;  %v575_v32 = vmax.f32 %v509_v22, 0.0  ;;  %v1026_v33 = vpack.c.bf16 %v540_v25, %v540_v25  ;;  %v541_v35 = vmax.f32 %v373_v27, 0.0 }
 0x11b   :  { %v1058_v34 = vpack.c.bf16 %v572_v26, %v572_v26  ;;  %v573_v36 = vmax.f32 %v501_v28, 0.0  ;;  %863 = vst.msk [vmem:[%s1740_s3 + $0x78] sm:$0xf] %vm832_vm3, %v1028_v29  ;;  %v1029_v38 = vpack.c.bf16 %v543_v31, %v543_v31 }
 0x11c   :  { %895 = vst.msk [vmem:[%s1740_s3 + $0xf8] sm:$0xf] %vm832_vm3, %v1060_v30  ;;  %v1061_v37 = vpack.c.bf16 %v575_v32, %v575_v32  ;;  %861 = vst.msk [vmem:[%s1740_s3 + $0x70] sm:$0xf] %vm832_vm3, %v1026_v33  ;;  %v1027_v39 = vpack.c.bf16 %v541_v35, %v541_v35 }
 0x11d   :  { %893 = vst.msk [vmem:[%s1740_s3 + $0xf0] sm:$0xf] %vm832_vm3, %v1058_v34  ;;  %v1059_v40 = vpack.c.bf16 %v573_v36, %v573_v36  ;;  %864 = vst.msk [vmem:[%s1740_s3 + $0x7c] sm:$0xf] %vm832_vm3, %v1029_v38 }
 0x11e   :  { %896 = vst.msk [vmem:[%s1740_s3 + $0xfc] sm:$0xf] %vm832_vm3, %v1061_v37  ;;  %862 = vst.msk [vmem:[%s1740_s3 + $0x74] sm:$0xf] %vm832_vm3, %v1027_v39 }
 0x11f   :  { %894 = vst.msk [vmem:[%s1740_s3 + $0xf4] sm:$0xf] %vm832_vm3, %v1059_v40 }

</bundles_post_ra>
